<compile_context>
chip_gen: v7x
topology: tpu7x:2x2x1
jax: 0.10.0
libtpu: 0.0.40
codegen_flags: <defaults>
</compile_context>

<pallas_src>
import jax
import jax.numpy as jnp
from jax.experimental import pallas as pl
from jax.experimental.pallas import tpu as pltpu

IN_FEATURES = 768   # fixed by nn.Linear(768, 512)
OUT_FEATURES = 512


def _cdiv(a, b):
    return (a + b - 1) // b


def _round_up(x, m):
    return ((x + m - 1) // m) * m


def _pick_m_tile(M, tm):
    """Pick the M-tile edge.

    * Large M (>= 2*tm): use `tm` (multiple of 128); trailing block partial.
    * Small/medium M: split into ~2 tiles so both v7x TensorCores get work
      through the "parallel" grid axis.
    * Edges are multiples of 16 (128 when M allows) for clean sublane packing
      and MXU alignment.
    """
    if M >= 2 * tm:
        return tm
    half = _cdiv(M, 2)
    if half >= 128:
        return min(tm, _round_up(half, 128))
    return max(16, _round_up(half, 16))


def _linear_kernel(x_ref, w_ref, b_ref, o_ref):
    """One M-tile: o = cast_bf16(x_tile) @ w_bf16 + bias, f32 accumulate."""
    # Fused cast: x arrives from HBM as f32; cast to bf16 in VMEM (no separate
    # XLA cast pass over x). Single full-K MXU dot, bias add on the VPU.
    x_bf = x_ref[...].astype(jnp.bfloat16)
    acc = jnp.dot(x_bf, w_ref[...], preferred_element_type=jnp.float32)
    o_ref[...] = (acc + b_ref[...]).astype(o_ref.dtype)


def linear_subr_pallas(x2d, w_t, bias, *, tm=512, out_dtype=jnp.float32):
    """y = x2d @ w_t + bias on the MXU via a single-pass Pallas kernel.

    x2d : (M, 768) float32, M = batch * vision_seq_len (any M >= 1)
    w_t : (768, 512) float32  (nn.Linear weight, transposed)
    bias: (512,)   float32
    Returns (M, 512) in `out_dtype` (default float32).
    """
    M, K = x2d.shape
    Kw, N = w_t.shape
    assert K == Kw == IN_FEATURES and N == OUT_FEATURES

    tm = max(128, _round_up(tm, 128))
    tm_eff = _pick_m_tile(M, tm)
    grid_m = _cdiv(M, tm_eff)

    # Weight cast to bf16 once in the wrapper (tiny, 1.5 MB one-time pass);
    # it stays resident in VMEM across all grid steps (constant index_map).
    w_bf = w_t.astype(jnp.bfloat16)
    b2d = bias.reshape(1, N).astype(jnp.float32)

    out_bytes = jnp.dtype(out_dtype).itemsize
    cost = pl.CostEstimate(
        flops=2 * M * K * N,
        transcendentals=0,
        bytes_accessed=M * K * 4 + K * N * 2 + N * 4 + M * N * out_bytes,
    )

    # out_shape is exactly (M, N): the trailing partial block's store is
    # clipped to the array bounds by the pipeline, so no garbage rows exist
    # and no post-slice is needed.
    out = pl.pallas_call(
        _linear_kernel,
        out_shape=jax.ShapeDtypeStruct((M, N), out_dtype),
        grid_spec=pltpu.PrefetchScalarGridSpec(
            num_scalar_prefetch=0,
            grid=(grid_m,),
            in_specs=[
                pl.BlockSpec((tm_eff, K), lambda i: (i, 0)),  # x M-tiles (full K), f32
                pl.BlockSpec((K, N), lambda i: (0, 0)),       # whole bf16 weight, resident
                pl.BlockSpec((1, N), lambda i: (0, 0)),       # bias, resident
            ],
            out_specs=pl.BlockSpec((tm_eff, N), lambda i: (i, 0)),
        ),
        compiler_params=pltpu.CompilerParams(
            dimension_semantics=("parallel",),  # M tiles split across TCs on v7x
        ),
        cost_estimate=cost,
    )(x2d, w_bf, b2d)

    return out


def add_linear_on_clip_forward(pixel_values, input_ids, attention_mask, params):
    """Mirrors AddLinearOnCLIP.forward: returns (img, subr, sent, words).

    The backbone outputs are synthesized deterministically from shapes
    (TODO(synk) above); the linear_subr projection runs in the Pallas kernel.
    """
    batch_size = pixel_values.shape[0]

    # ---- synthetic stand-ins for the CLIP backbone outputs ----------------
    kb = jax.random.PRNGKey(42)
    k_img, k_vis, k_sent, k_words = jax.random.split(kb, 4)
    vis_seq = params["vision_seq_len"]
    txt_seq = input_ids.shape[1]
    img = jax.random.normal(k_img, (batch_size, 512), jnp.float32)            # image_embeds
    vision_hidden = jax.random.normal(
        k_vis, (batch_size, vis_seq, IN_FEATURES), jnp.float32)               # vision last_hidden_state
    sent = jax.random.normal(k_sent, (batch_size, 512), jnp.float32)          # text_embeds
    words = jax.random.normal(k_words, (batch_size, txt_seq, 512), jnp.float32)  # text last_hidden_state

    # ---- the trainable hot path: linear_subr, in Pallas --------------------
    x2d = vision_hidden.reshape(-1, IN_FEATURES)             # .view(-1, 768)
    y2d = linear_subr_pallas(x2d, params["w_t"], params["b"])
    subr = y2d.reshape(batch_size, -1, OUT_FEATURES)         # .view(B, -1, 512)

    return img, subr, sent, words


if __name__ == "__main__":
    # Small shapes consistent with the forward pass.
    B = 2            # batch
    VIS_SEQ = 8      # vision sequence length (kept small; real CLIP-ViT/32 uses 50)
    TXT_SEQ = 8      # text sequence length
    IMG_HW = 16      # spatial size of pixel_values (only shapes matter here)

    key = jax.random.PRNGKey(0)
    k_px, k_w, k_b = jax.random.split(key, 3)

    # Module inputs (pixel_values NCHW, input_ids, attention_mask).
    pixel_values = jax.random.normal(k_px, (B, 3, IMG_HW, IMG_HW), jnp.float32)
    input_ids = jnp.arange(B * TXT_SEQ, dtype=jnp.int32).reshape(B, TXT_SEQ)
    attention_mask = jnp.ones((B, TXT_SEQ), jnp.int32)

    # Deterministic nn.Linear(768, 512) parameters (uniform, like PyTorch's
    # default kaiming-uniform scale 1/sqrt(fan_in)).
    bound = 1.0 / (IN_FEATURES ** 0.5)
    w = jax.random.uniform(k_w, (OUT_FEATURES, IN_FEATURES), jnp.float32,
                           minval=-bound, maxval=bound)     # PyTorch layout (out, in)
    b = jax.random.uniform(k_b, (OUT_FEATURES,), jnp.float32,
                           minval=-bound, maxval=bound)
    params = {"w_t": w.T, "b": b, "vision_seq_len": VIS_SEQ}

    img, subr, sent, words = add_linear_on_clip_forward(
        pixel_values, input_ids, attention_mask, params)
    jax.block_until_ready((img, subr, sent, words))

    # Sanity-check the Pallas linear against a plain-JAX f32 reference.
    # (bf16 matmul inputs with f32 accumulation -> relax tolerance vs pure f32.)
    kb = jax.random.PRNGKey(42)
    _, k_vis, _, _ = jax.random.split(kb, 4)
    vision_hidden = jax.random.normal(k_vis, (B, VIS_SEQ, IN_FEATURES), jnp.float32)
    ref = vision_hidden.reshape(-1, IN_FEATURES) @ w.T + b
    ref = ref.reshape(B, VIS_SEQ, OUT_FEATURES)
    assert subr.shape == (B, VIS_SEQ, OUT_FEATURES)
    assert jnp.allclose(subr, ref, atol=5e-2, rtol=5e-2)

    # Ragged real-CLIP row count (B*50 = 100): exercises the >=2-tile small-M
    # path (tile 64, grid 2) with a partial trailing block and no padding.
    x_ragged = jax.random.normal(jax.random.PRNGKey(7), (100, IN_FEATURES),
                                 jnp.float32)
    y_ragged = linear_subr_pallas(x_ragged, params["w_t"], params["b"])
    ref_r = x_ragged @ w.T + b
    jax.block_until_ready(y_ragged)
    assert y_ragged.shape == (100, OUT_FEATURES)
    assert jnp.allclose(y_ragged, ref_r, atol=5e-2, rtol=5e-2)

    # Larger M: exercises the tm=512 path with multiple tiles plus a partial
    # trailing block, and the optional bf16 output stream.
    x_big = jax.random.normal(jax.random.PRNGKey(11), (1111, IN_FEATURES),
                              jnp.float32)
    y_big = linear_subr_pallas(x_big, params["w_t"], params["b"],
                               out_dtype=jnp.bfloat16)
    ref_b = x_big @ w.T + b
    jax.block_until_ready(y_big)
    assert y_big.shape == (1111, OUT_FEATURES)
    assert jnp.allclose(y_big.astype(jnp.float32), ref_b, atol=5e-2, rtol=5e-2)

    print("KERNEL_OK")
</pallas_src>

<mosaic_0001>
module attributes {stable_mosaic.version = 11 : i64} {
  func.func @_linear_kernel(%arg0: i32, %arg1: memref<16x768xf32, #tpu.memory_space<vmem>>, %arg2: memref<768x512xbf16, #tpu.memory_space<vmem>>, %arg3: memref<1x512xf32, #tpu.memory_space<vmem>>, %arg4: memref<16x512xf32, #tpu.memory_space<vmem>>) attributes {dimension_semantics = [#tpu.dimension_semantics<parallel>], iteration_bounds = array<i64: 1>, scalar_prefetch = 0 : i64, scratch_operands = 0 : i64, tpu.core_type = #tpu.core_type<tc>, window_params = [{transform_indices = @transform_0, window_bounds = array<i64: 16, 768>}, {pipeline_mode = #tpu.pipeline_mode<synchronous>, transform_indices = @transform_1, window_bounds = array<i64: 768, 512>}, {pipeline_mode = #tpu.pipeline_mode<synchronous>, transform_indices = @transform_2, window_bounds = array<i64: 1, 512>}, {transform_indices = @transform_3, window_bounds = array<i64: 16, 512>}]} {
    %c0 = arith.constant 0 : index
    %c0_0 = arith.constant 0 : index
    %0 = vector.load %arg1[%c0, %c0_0] : memref<16x768xf32, #tpu.memory_space<vmem>>, vector<16x768xf32>
    %1 = arith.truncf %0 : vector<16x768xf32> to vector<16x768xbf16>
    %c0_1 = arith.constant 0 : index
    %c0_2 = arith.constant 0 : index
    %2 = vector.load %arg2[%c0_1, %c0_2] : memref<768x512xbf16, #tpu.memory_space<vmem>>, vector<768x512xbf16>
    %cst = arith.constant dense<0.000000e+00> : vector<16x512xf32>
    %3 = tpu.matmul %1, %2, %cst {dimension_numbers = #tpu.dot_dimension_numbers<[1], [0], [0], [1], [0, 0, 1, 1], [], []>} : vector<16x768xbf16>, vector<768x512xbf16>, vector<16x512xf32> -> vector<16x512xf32>
    %c0_3 = arith.constant 0 : index
    %c0_4 = arith.constant 0 : index
    %4 = vector.load %arg3[%c0_3, %c0_4] : memref<1x512xf32, #tpu.memory_space<vmem>>, vector<1x512xf32>
    %5 = vector.broadcast %4 : vector<1x512xf32> to vector<16x512xf32>
    %6 = arith.addf %3, %5 : vector<16x512xf32>
    %c0_5 = arith.constant 0 : index
    %c0_6 = arith.constant 0 : index
    %7 = vector.load %arg4[%c0_5, %c0_6] : memref<16x512xf32, #tpu.memory_space<vmem>>, vector<16x512xf32>
    tpu.vector_store %arg4[%c0_5, %c0_6], %6 {strides = array<i32>} : memref<16x512xf32, #tpu.memory_space<vmem>>, vector<16x512xf32>,
    return
  }
  func.func @transform_0(%arg0: i32) -> (i32, i32) {
    %c0_i32 = arith.constant 0 : i32
    %c0_i32_0 = arith.constant 0 : i32
    return %arg0, %c0_i32 : i32, i32
  }
  func.func @transform_1(%arg0: i32) -> (i32, i32) {
    %c0_i32 = arith.constant 0 : i32
    %c0_i32_0 = arith.constant 0 : i32
    %c0_i32_1 = arith.constant 0 : i32
    return %c0_i32, %c0_i32_0 : i32, i32
  }
  func.func @transform_2(%arg0: i32) -> (i32, i32) {
    %c0_i32 = arith.constant 0 : i32
    %c0_i32_0 = arith.constant 0 : i32
    %c0_i32_1 = arith.constant 0 : i32
    return %c0_i32, %c0_i32_0 : i32, i32
  }
  func.func @transform_3(%arg0: i32) -> (i32, i32) {
    %c0_i32 = arith.constant 0 : i32
    %c0_i32_0 = arith.constant 0 : i32
    return %arg0, %c0_i32 : i32, i32
  }
}

</mosaic_0001>

<bundles_post_ra>
// kernel: tpu_custom_call.1
= control target key start
LH: loop header
LB: loop body
LE: loop exit
PB: predicated region body
PF: predicated region fallthrough
CT: control target
= control target key end

     0   :  { %8 = vsyncpa [#allocation3], 0  ;;  %s2172_s0 = inlined_call_operand.hbm [shape: f32[16,768], index: 0, kind: input, shape index: {}]   ;;  %s2173_s1 = inlined_call_operand.hbm [shape: bf16[768,512], index: 1, kind: input, shape index: {}]   ;;  %s2174_s2 = inlined_call_operand.vmem [shape: f32[1,512], index: 2, kind: input, shape index: {}]   ;;  %s2175_s3 = inlined_call_operand.hbm [shape: f32[16,512], index: 3, kind: output, shape index: {}]  }
   0x1   :  { %9 = vsyncpa [#allocation6], 0 }
   0x2   :  { %10 = vsyncpa [#allocation4], 0  ;;  %s2104_s12 = smov [#allocation2]   ;;  %s2032_s16 = scalar_lea.hbm %s2172_s0, 1536 }
   0x3   :  { %s16_s13 = sshll.u32 %s2104_s12, 4  ;;  %p2033_p0 = scmp.ne.s32.totalorder %s2172_s0, %s2032_s16  ;;  %s17_s13 = int_to_ptr.vmem [resolvable:$true] %s16_s13 }
   0x4   :  { %p2036_p1 = scmp.lt.u32.totalorder %s2032_s16, %s2172_s0 }
   0x6   :  { %p2038_p2 = pnand %p2036_p1, %p2033_p0 }
   0x8   :  { %2041 = shalt.err (!%p2038_p2)
}
   0x9   :  { %s2042_s21 = scalar_lea.vmem %s17_s13, 1536  ;;  %p2047_p4 = scmp.lt.s32.totalorder %s17_s13, %s17_s13 }
   0xa   :  { %p2043_p3 = scmp.ne.s32.totalorder %s17_s13, %s2042_s21  ;;  %p2048_p5 = scmp.lt.s32.totalorder %s2042_s21, %s2042_s21 }
   0xc   :  { %p2049_p6 = por %p2048_p5, %p2047_p4 }
   0xe   :  { %p2050_p7 = pnand %p2049_p6, %p2043_p3 }
  0x10   :  { %2053 = shalt.err (!%p2050_p7)
}
  0x11   :  { %s2105_s22 = smov 768   ;;  %s2106_s23 = smov 48  }
  0x12   :  { %22 = dma.hbm_to_vmem [thread:$0]  %s2172_s0, 1536, %s17_s13, [#allocation3], %s2105_s22, %s2105_s22, %s2106_s23  }
  0x13   :  { %s2107_s26 = smov [#allocation5]   ;;  %s2054_s30 = scalar_lea.hbm %s2173_s1, 24576 }
  0x14   :  { %s28_s27 = sshll.u32 %s2107_s26, 4  ;;  %p2055_p8 = scmp.ne.s32.totalorder %s2173_s1, %s2054_s30  ;;  %s29_s27 = int_to_ptr.vmem [resolvable:$true] %s28_s27 }
  0x15   :  { %p2058_p9 = scmp.lt.u32.totalorder %s2054_s30, %s2173_s1 }
  0x17   :  { %p2060_p10 = pnand %p2058_p9, %p2055_p8 }
  0x19   :  { %2063 = shalt.err (!%p2060_p10)
}
  0x1a   :  { %s2064_s8 = scalar_lea.vmem %s29_s27, 24576  ;;  %p2069_p12 = scmp.lt.s32.totalorder %s29_s27, %s29_s27 }
  0x1b   :  { %p2065_p11 = scmp.ne.s32.totalorder %s29_s27, %s2064_s8  ;;  %p2070_p13 = scmp.lt.s32.totalorder %s2064_s8, %s2064_s8 }
  0x1d   :  { %p2071_p0 = por %p2070_p13, %p2069_p12 }
  0x1f   :  { %p2072_p1 = pnand %p2071_p0, %p2065_p11 }
  0x21   :  { %2075 = shalt.err (!%p2072_p1)
}
  0x22   :  { %s2108_s0 = smov 256   ;;  %s2109_s9 = smov 16  }
  0x23   :  { %34 = dma.hbm_to_vmem [thread:$0]  %s2173_s1, 24576, %s29_s27, [#allocation6], %s2108_s0, %s2108_s0, %s2109_s9  }
  0x24   :  { %2098 = dma.done.wait [#allocation3], 1536  }
  0x25   :  { %2099 = vsyncadd [#allocation3], 4294965760 }
  0x26   :  { %2100 = dma.done.wait [#allocation6], 24576  }
  0x27   :  { %2101 = vsyncadd [#allocation6], 4294942720  ;;  %v1744_v0 = vld [vmem:[#allocation5 + $0x4] ss:$16 sps:$4 sm:$0xff]   ;;  %v1746_v1 = vld [vmem:[#allocation5 + $0xc] ss:$16 sps:$4 sm:$0xff]  }
  0x28   :  { %1235 = vmatprep.subr.bf16.mxu0 %v1744_v0  ;;  %v1748_v2 = vld [vmem:[#allocation5] ss:$16 sps:$4 sm:$0xff]   ;;  %v1749_v3 = vld [vmem:[#allocation5 + $0x8] ss:$16 sps:$4 sm:$0xff]   ;;  %1364 = vmatprep.subr.bf16.mxu1 %v1746_v1  ;;  %v1750_v4 = vld [vmem:[#allocation5 + $0x24] ss:$16 sps:$4 sm:$0xff]  }
  0x29   :  { %1236 = vmatpush1.bf16.msra.mxu0 %v1748_v2  ;;  %1365 = vmatpush1.bf16.msra.mxu1 %v1749_v3  ;;  %v1752_v5 = vld [vmem:[#allocation5 + $0x2c] ss:$16 sps:$4 sm:$0xff]   ;;  %v1754_v6 = vld [vmem:[#allocation5 + $0x20] ss:$16 sps:$4 sm:$0xff]   ;;  %v1755_v7 = vld [vmem:[#allocation5 + $0x28] ss:$16 sps:$4 sm:$0xff]  }
  0x2a   :  { %1237 = vmatprep.subr.bf16.mxu0 %v1750_v4  ;;  %1366 = vmatprep.subr.bf16.mxu1 %v1752_v5  ;;  %v1756_v8 = vld [vmem:[#allocation5 + $0x44] ss:$16 sps:$4 sm:$0xff]   ;;  %v1758_v9 = vld [vmem:[#allocation5 + $0x4c] ss:$16 sps:$4 sm:$0xff]   ;;  %v1760_v10 = vld [vmem:[#allocation5 + $0x40] ss:$16 sps:$4 sm:$0xff]  }
  0x2b   :  { %v1761_v11 = vld [vmem:[#allocation5 + $0x48] ss:$16 sps:$4 sm:$0xff]   ;;  %v1762_v12 = vld [vmem:[#allocation5 + $0x64] ss:$16 sps:$4 sm:$0xff]   ;;  %v1764_v13 = vld [vmem:[#allocation5 + $0x6c] ss:$16 sps:$4 sm:$0xff]  }
  0x2c   :  { %v1766_v14 = vld [vmem:[#allocation5 + $0x60] ss:$16 sps:$4 sm:$0xff]   ;;  %v1767_v15 = vld [vmem:[#allocation5 + $0x68] ss:$16 sps:$4 sm:$0xff]   ;;  %v1768_v16 = vld [vmem:[#allocation5 + $0x84] ss:$16 sps:$4 sm:$0xff]  }
  0x2d   :  { %1238 = vmatpush1.bf16.msra.mxu0 %v1754_v6  ;;  %1367 = vmatpush1.bf16.msra.mxu1 %v1755_v7  ;;  %v1770_v17 = vld [vmem:[#allocation5 + $0x8c] ss:$16 sps:$4 sm:$0xff]   ;;  %v1772_v18 = vld [vmem:[#allocation5 + $0x80] ss:$16 sps:$4 sm:$0xff]   ;;  %v1773_v19 = vld [vmem:[#allocation5 + $0x88] ss:$16 sps:$4 sm:$0xff]  }
  0x2e   :  { %1239 = vmatprep.subr.bf16.mxu0 %v1756_v8  ;;  %1368 = vmatprep.subr.bf16.mxu1 %v1758_v9  ;;  %v1774_v20 = vld [vmem:[#allocation5 + $0xa4] ss:$16 sps:$4 sm:$0xff]   ;;  %v1776_v21 = vld [vmem:[#allocation5 + $0xac] ss:$16 sps:$4 sm:$0xff]   ;;  %v1778_v22 = vld [vmem:[#allocation5 + $0xa0] ss:$16 sps:$4 sm:$0xff]  }
  0x2f   :  { %v1779_v23 = vld [vmem:[#allocation5 + $0xa8] ss:$16 sps:$4 sm:$0xff]   ;;  %v1780_v24 = vld [vmem:[#allocation5 + $0xc4] ss:$16 sps:$4 sm:$0xff]   ;;  %v1782_v25 = vld [vmem:[#allocation5 + $0xcc] ss:$16 sps:$4 sm:$0xff]  }
  0x30   :  { %v1784_v26 = vld [vmem:[#allocation5 + $0xc0] ss:$16 sps:$4 sm:$0xff]   ;;  %v1785_v27 = vld [vmem:[#allocation5 + $0xc8] ss:$16 sps:$4 sm:$0xff]   ;;  %v1786_v28 = vld [vmem:[#allocation5 + $0xe4] ss:$16 sps:$4 sm:$0xff]  }
  0x31   :  { %1240 = vmatpush1.bf16.msra.mxu0 %v1760_v10  ;;  %1369 = vmatpush1.bf16.msra.mxu1 %v1761_v11  ;;  %v1788_v29 = vld [vmem:[#allocation5 + $0xec] ss:$16 sps:$4 sm:$0xff]   ;;  %v1790_v30 = vld [vmem:[#allocation5 + $0xe0] ss:$16 sps:$4 sm:$0xff]   ;;  %v1791_v31 = vld [vmem:[#allocation5 + $0xe8] ss:$16 sps:$4 sm:$0xff]  }
  0x32   :  { %1241 = vmatprep.subr.bf16.mxu0 %v1762_v12  ;;  %1370 = vmatprep.subr.bf16.mxu1 %v1764_v13  ;;  %v1792_v32 = vld [vmem:[#allocation5 + $0x104] ss:$16 sps:$4 sm:$0xff]   ;;  %v1794_v33 = vld [vmem:[#allocation5 + $0x10c] ss:$16 sps:$4 sm:$0xff]   ;;  %v1796_v34 = vld [vmem:[#allocation5 + $0x100] ss:$16 sps:$4 sm:$0xff]  }
  0x33   :  { %v1797_v35 = vld [vmem:[#allocation5 + $0x108] ss:$16 sps:$4 sm:$0xff]   ;;  %v1798_v36 = vld [vmem:[#allocation5 + $0x124] ss:$16 sps:$4 sm:$0xff]   ;;  %v1800_v37 = vld [vmem:[#allocation5 + $0x12c] ss:$16 sps:$4 sm:$0xff]  }
  0x34   :  { %v1802_v38 = vld [vmem:[#allocation5 + $0x120] ss:$16 sps:$4 sm:$0xff]   ;;  %v1803_v39 = vld [vmem:[#allocation5 + $0x128] ss:$16 sps:$4 sm:$0xff]   ;;  %v1804_v40 = vld [vmem:[#allocation5 + $0x144] ss:$16 sps:$4 sm:$0xff]  }
  0x35   :  { %1242 = vmatpush1.bf16.msra.mxu0 %v1766_v14  ;;  %1371 = vmatpush1.bf16.msra.mxu1 %v1767_v15  ;;  %v1806_v41 = vld [vmem:[#allocation5 + $0x14c] ss:$16 sps:$4 sm:$0xff]   ;;  %v1808_v42 = vld [vmem:[#allocation5 + $0x140] ss:$16 sps:$4 sm:$0xff]   ;;  %v1809_v43 = vld [vmem:[#allocation5 + $0x148] ss:$16 sps:$4 sm:$0xff]  }
  0x36   :  { %1243 = vmatprep.subr.bf16.mxu0 %v1768_v16  ;;  %1372 = vmatprep.subr.bf16.mxu1 %v1770_v17  ;;  %v1810_v44 = vld [vmem:[#allocation5 + $0x164] ss:$16 sps:$4 sm:$0xff]   ;;  %v1812_v45 = vld [vmem:[#allocation5 + $0x16c] ss:$16 sps:$4 sm:$0xff]   ;;  %v1814_v48 = vld [vmem:[#allocation5 + $0x160] ss:$16 sps:$4 sm:$0xff]  }
  0x37   :  { %v44_v46 = vld [vmem:[#allocation2 + $0x8] sm:$0xff]  ;;  %v50_v47 = vld [vmem:[#allocation2 + $0x38] sm:$0xff]  ;;  %v1816_v51 = vld [vmem:[#allocation5 + $0x184] ss:$16 sps:$4 sm:$0xff]   ;;  %s2110_s13 = smov [#allocation7]  }
  0x38   :  { %v1815_v49 = vld [vmem:[#allocation5 + $0x168] ss:$16 sps:$4 sm:$0xff]   ;;  %v56_v50 = vpack.c.bf16 %v50_v47, %v44_v46  ;;  %v1818_v52 = vld [vmem:[#allocation5 + $0x18c] ss:$16 sps:$4 sm:$0xff]   ;;  %v1820_v53 = vld [vmem:[#allocation5 + $0x180] ss:$16 sps:$4 sm:$0xff]  }
  0x39   :  { %1244 = vmatpush1.bf16.msra.mxu0 %v1772_v18  ;;  %1373 = vmatpush1.bf16.msra.mxu1 %v1773_v19  ;;  %v1821_v54 = vld [vmem:[#allocation5 + $0x188] ss:$16 sps:$4 sm:$0xff]   ;;  %v1822_v55 = vld [vmem:[#allocation5 + $0x1a4] ss:$16 sps:$4 sm:$0xff]   ;;  %v1824_v56 = vld [vmem:[#allocation5 + $0x1ac] ss:$16 sps:$4 sm:$0xff]  }
  0x3a   :  { %1245 = vmatprep.subr.bf16.mxu0 %v1774_v20  ;;  %1374 = vmatprep.subr.bf16.mxu1 %v1776_v21  ;;  %v1826_v57 = vld [vmem:[#allocation5 + $0x1a0] ss:$16 sps:$4 sm:$0xff]   ;;  %v1827_v58 = vld [vmem:[#allocation5 + $0x1a8] ss:$16 sps:$4 sm:$0xff]   ;;  %v1828_v59 = vld [vmem:[#allocation5 + $0x1c4] ss:$16 sps:$4 sm:$0xff]  }
  0x3b   :  { %1267 = vmatprep.mubr.bf16.mxu0 %v56_v50  ;;  %1396 = vmatprep.mubr.bf16.mxu1 %v56_v50  ;;  %v1830_v60 = vld [vmem:[#allocation5 + $0x1cc] ss:$16 sps:$4 sm:$0xff]   ;;  %v1832_v61 = vld [vmem:[#allocation5 + $0x1c0] ss:$16 sps:$4 sm:$0xff]   ;;  %v1833_v62 = vld [vmem:[#allocation5 + $0x1c8] ss:$16 sps:$4 sm:$0xff]  }
  0x3c   :  { %v1834_v63 = vld [vmem:[#allocation5 + $0x1e4] ss:$16 sps:$4 sm:$0xff]   ;;  %v1836_v0 = vld [vmem:[#allocation5 + $0x1ec] ss:$16 sps:$4 sm:$0xff]   ;;  %v1838_v1 = vld [vmem:[#allocation5 + $0x1e0] ss:$16 sps:$4 sm:$0xff]  }
  0x3d   :  { %1246 = vmatpush1.bf16.msra.mxu0 %v1778_v22  ;;  %1375 = vmatpush1.bf16.msra.mxu1 %v1779_v23  ;;  %v1839_v2 = vld [vmem:[#allocation5 + $0x1e8] ss:$16 sps:$4 sm:$0xff]   ;;  %v1842_v3 = vld [vmem:[#allocation5 + $0x204] ss:$16 sps:$4 sm:$0xff]   ;;  %v1845_v6 = vld [vmem:[#allocation5 + $0x20c] ss:$16 sps:$4 sm:$0xff]  }
  0x3e   :  { %1247 = vmatprep.subr.bf16.mxu0 %v1780_v24  ;;  %1376 = vmatprep.subr.bf16.mxu1 %v1782_v25  ;;  %v43_v4 = vld [vmem:[#allocation2] sm:$0xff]  ;;  %v49_v5 = vld [vmem:[#allocation2 + $0x30] sm:$0xff]  ;;  %v1843_v8 = vld [vmem:[#allocation5 + $0x208] ss:$16 sps:$4 sm:$0xff]   ;;  %s1506_s14 = sshll.u32 %s2110_s13, 4  ;;  %s1507_s14 = int_to_ptr.vmem [resolvable:$true] %s1506_s14 }
  0x3f   :  { %v1840_v7 = vld [vmem:[#allocation5 + $0x200] ss:$16 sps:$4 sm:$0xff]   ;;  %v55_v9 = vpack.c.bf16 %v49_v5, %v43_v4  ;;  %v1848_v10 = vld [vmem:[#allocation5 + $0x224] ss:$16 sps:$4 sm:$0xff]   ;;  %v1851_v11 = vld [vmem:[#allocation5 + $0x22c] ss:$16 sps:$4 sm:$0xff]   ;;  %p2081_p3 = scmp.lt.s32.totalorder %s1507_s14, %s1507_s14 }
  0x40   :  { %v1846_v12 = vld [vmem:[#allocation5 + $0x220] ss:$16 sps:$4 sm:$0xff]   ;;  %v1849_v13 = vld [vmem:[#allocation5 + $0x228] ss:$16 sps:$4 sm:$0xff]   ;;  %v1854_v14 = vld [vmem:[#allocation5 + $0x244] ss:$16 sps:$4 sm:$0xff]  }
  0x41   :  { %1248 = vmatpush1.bf16.msra.mxu0 %v1784_v26  ;;  %1377 = vmatpush1.bf16.msra.mxu1 %v1785_v27  ;;  %v1857_v15 = vld [vmem:[#allocation5 + $0x24c] ss:$16 sps:$4 sm:$0xff]   ;;  %v1852_v16 = vld [vmem:[#allocation5 + $0x240] ss:$16 sps:$4 sm:$0xff]   ;;  %v1855_v17 = vld [vmem:[#allocation5 + $0x248] ss:$16 sps:$4 sm:$0xff]  }
  0x42   :  { %1249 = vmatprep.subr.bf16.mxu0 %v1786_v28  ;;  %1378 = vmatprep.subr.bf16.mxu1 %v1788_v29  ;;  %v1860_v18 = vld [vmem:[#allocation5 + $0x264] ss:$16 sps:$4 sm:$0xff]   ;;  %v1863_v19 = vld [vmem:[#allocation5 + $0x26c] ss:$16 sps:$4 sm:$0xff]   ;;  %v1858_v20 = vld [vmem:[#allocation5 + $0x260] ss:$16 sps:$4 sm:$0xff]  }
  0x43   :  { %v1861_v21 = vld [vmem:[#allocation5 + $0x268] ss:$16 sps:$4 sm:$0xff]   ;;  %v1866_v22 = vld [vmem:[#allocation5 + $0x284] ss:$16 sps:$4 sm:$0xff]   ;;  %v1869_v23 = vld [vmem:[#allocation5 + $0x28c] ss:$16 sps:$4 sm:$0xff]  }
  0x44   :  { %v1864_v24 = vld [vmem:[#allocation5 + $0x280] ss:$16 sps:$4 sm:$0xff]   ;;  %v1867_v25 = vld [vmem:[#allocation5 + $0x288] ss:$16 sps:$4 sm:$0xff]   ;;  %v1872_v26 = vld [vmem:[#allocation5 + $0x2a4] ss:$16 sps:$4 sm:$0xff]  }
  0x45   :  { %1250 = vmatpush1.bf16.msra.mxu0 %v1790_v30  ;;  %1379 = vmatpush1.bf16.msra.mxu1 %v1791_v31  ;;  %v1875_v27 = vld [vmem:[#allocation5 + $0x2ac] ss:$16 sps:$4 sm:$0xff]   ;;  %v1870_v28 = vld [vmem:[#allocation5 + $0x2a0] ss:$16 sps:$4 sm:$0xff]   ;;  %v1873_v29 = vld [vmem:[#allocation5 + $0x2a8] ss:$16 sps:$4 sm:$0xff]  }
  0x46   :  { %1251 = vmatprep.subr.bf16.mxu0 %v1792_v32  ;;  %1380 = vmatprep.subr.bf16.mxu1 %v1794_v33  ;;  %v1878_v30 = vld [vmem:[#allocation5 + $0x2c4] ss:$16 sps:$4 sm:$0xff]   ;;  %v1881_v31 = vld [vmem:[#allocation5 + $0x2cc] ss:$16 sps:$4 sm:$0xff]   ;;  %v1894_v47 = vld [vmem:[#allocation5 + $0x320] ss:$16 sps:$4 sm:$0xff]  }
  0x47   :  { %v46_v32 = vld [vmem:[#allocation2 + $0x18] sm:$0xff]  ;;  %v52_v33 = vld [vmem:[#allocation2 + $0x48] sm:$0xff]  ;;  %v1932_v5 = vld [vmem:[#allocation5 + $0x3e4] ss:$16 sps:$4 sm:$0xff]  }
  0x48   :  { %v1899_v46 = vld [vmem:[#allocation5 + $0x32c] ss:$16 sps:$4 sm:$0xff]   ;;  %v1927_v4 = vld [vmem:[#allocation5 + $0x3c8] ss:$16 sps:$4 sm:$0xff]  }
  0x49   :  { %1252 = vmatpush1.bf16.msra.mxu0 %v1796_v34  ;;  %1381 = vmatpush1.bf16.msra.mxu1 %v1797_v35  ;;  %v1876_v34 = vld [vmem:[#allocation5 + $0x2c0] ss:$16 sps:$4 sm:$0xff]   ;;  %v1879_v35 = vld [vmem:[#allocation5 + $0x2c8] ss:$16 sps:$4 sm:$0xff]   ;;  %v1905_v50 = vld [vmem:[#allocation5 + $0x34c] ss:$16 sps:$4 sm:$0xff]  }
  0x4a   :  { %1253 = vmatprep.subr.bf16.mxu0 %v1798_v36  ;;  %1382 = vmatprep.subr.bf16.mxu1 %v1800_v37  ;;  %v58_v36 = vpack.c.bf16 %v52_v33, %v46_v32  ;;  %v1884_v37 = vld [vmem:[#allocation5 + $0x2e4] ss:$16 sps:$4 sm:$0xff]   ;;  %v1965_v32 = vld [vmem:[#allocation5 + $0x48c] ss:$16 sps:$4 sm:$0xff]   ;;  %v1960_v33 = vld [vmem:[#allocation5 + $0x480] ss:$16 sps:$4 sm:$0xff]  }
  0x4d   :  { %1254 = vmatpush1.bf16.msra.mxu0 %v1802_v38  ;;  %1383 = vmatpush1.bf16.msra.mxu1 %v1803_v39  ;;  %v1887_v38 = vld [vmem:[#allocation5 + $0x2ec] ss:$16 sps:$4 sm:$0xff]   ;;  %v1882_v39 = vld [vmem:[#allocation5 + $0x2e0] ss:$16 sps:$4 sm:$0xff]  }
  0x4e   :  { %1255 = vmatprep.subr.bf16.mxu0 %v1804_v40  ;;  %1384 = vmatprep.subr.bf16.mxu1 %v1806_v41  ;;  %v1885_v40 = vld [vmem:[#allocation5 + $0x2e8] ss:$16 sps:$4 sm:$0xff]   ;;  %v1890_v41 = vld [vmem:[#allocation5 + $0x304] ss:$16 sps:$4 sm:$0xff]  }
  0x51   :  { %1256 = vmatpush1.bf16.msra.mxu0 %v1808_v42  ;;  %1385 = vmatpush1.bf16.msra.mxu1 %v1809_v43  ;;  %v1893_v42 = vld [vmem:[#allocation5 + $0x30c] ss:$16 sps:$4 sm:$0xff]   ;;  %v1888_v43 = vld [vmem:[#allocation5 + $0x300] ss:$16 sps:$4 sm:$0xff]  }
  0x52   :  { %1257 = vmatprep.subr.bf16.mxu0 %v1810_v44  ;;  %1386 = vmatprep.subr.bf16.mxu1 %v1812_v45  ;;  %v1891_v44 = vld [vmem:[#allocation5 + $0x308] ss:$16 sps:$4 sm:$0xff]   ;;  %v1896_v45 = vld [vmem:[#allocation5 + $0x324] ss:$16 sps:$4 sm:$0xff]  }
  0x55   :  { %1258 = vmatpush1.bf16.msra.mxu0 %v1814_v48  ;;  %1387 = vmatpush1.bf16.msra.mxu1 %v1815_v49  ;;  %v1897_v48 = vld [vmem:[#allocation5 + $0x328] ss:$16 sps:$4 sm:$0xff]   ;;  %v1902_v49 = vld [vmem:[#allocation5 + $0x344] ss:$16 sps:$4 sm:$0xff]  }
  0x56   :  { %1259 = vmatprep.subr.bf16.mxu0 %v1816_v51  ;;  %1388 = vmatprep.subr.bf16.mxu1 %v1818_v52  ;;  %v1900_v51 = vld [vmem:[#allocation5 + $0x340] ss:$16 sps:$4 sm:$0xff]   ;;  %v1903_v52 = vld [vmem:[#allocation5 + $0x348] ss:$16 sps:$4 sm:$0xff]  }
  0x59   :  { %1260 = vmatpush1.bf16.msra.mxu0 %v1820_v53  ;;  %1389 = vmatpush1.bf16.msra.mxu1 %v1821_v54  ;;  %v1908_v53 = vld [vmem:[#allocation5 + $0x364] ss:$16 sps:$4 sm:$0xff]   ;;  %v1911_v54 = vld [vmem:[#allocation5 + $0x36c] ss:$16 sps:$4 sm:$0xff]  }
  0x5a   :  { %1261 = vmatprep.subr.bf16.mxu0 %v1822_v55  ;;  %1390 = vmatprep.subr.bf16.mxu1 %v1824_v56  ;;  %v1906_v55 = vld [vmem:[#allocation5 + $0x360] ss:$16 sps:$4 sm:$0xff]   ;;  %v1909_v56 = vld [vmem:[#allocation5 + $0x368] ss:$16 sps:$4 sm:$0xff]  }
  0x5d   :  { %1262 = vmatpush1.bf16.msra.mxu0 %v1826_v57  ;;  %1391 = vmatpush1.bf16.msra.mxu1 %v1827_v58  ;;  %v1914_v57 = vld [vmem:[#allocation5 + $0x384] ss:$16 sps:$4 sm:$0xff]   ;;  %v1917_v58 = vld [vmem:[#allocation5 + $0x38c] ss:$16 sps:$4 sm:$0xff]  }
  0x5e   :  { %1263 = vmatprep.subr.bf16.mxu0 %v1828_v59  ;;  %1392 = vmatprep.subr.bf16.mxu1 %v1830_v60  ;;  %v1912_v59 = vld [vmem:[#allocation5 + $0x380] ss:$16 sps:$4 sm:$0xff]   ;;  %v1915_v60 = vld [vmem:[#allocation5 + $0x388] ss:$16 sps:$4 sm:$0xff]  }
  0x61   :  { %1264 = vmatpush1.bf16.msra.mxu0 %v1832_v61  ;;  %1393 = vmatpush1.bf16.msra.mxu1 %v1833_v62  ;;  %v1920_v61 = vld [vmem:[#allocation5 + $0x3a4] ss:$16 sps:$4 sm:$0xff]   ;;  %v1923_v62 = vld [vmem:[#allocation5 + $0x3ac] ss:$16 sps:$4 sm:$0xff]  }
  0x62   :  { %1265 = vmatprep.subr.bf16.mxu0 %v1834_v63  ;;  %1394 = vmatprep.subr.bf16.mxu1 %v1836_v0  ;;  %v1918_v63 = vld [vmem:[#allocation5 + $0x3a0] ss:$16 sps:$4 sm:$0xff]   ;;  %v1921_v0 = vld [vmem:[#allocation5 + $0x3a8] ss:$16 sps:$4 sm:$0xff]  }
  0x65   :  { %1266 = vmatpush1.bf16.msra.mxu0 %v1838_v1  ;;  %1395 = vmatpush1.bf16.msra.mxu1 %v1839_v2  ;;  %v1926_v1 = vld [vmem:[#allocation5 + $0x3c4] ss:$16 sps:$4 sm:$0xff]   ;;  %v1929_v2 = vld [vmem:[#allocation5 + $0x3cc] ss:$16 sps:$4 sm:$0xff]  }
  0x66   :  { %1278 = vmatprep.subr.bf16.mxu0 %v1842_v3  ;;  %1407 = vmatprep.subr.bf16.mxu1 %v1845_v6  ;;  %v1924_v3 = vld [vmem:[#allocation5 + $0x3c0] ss:$16 sps:$4 sm:$0xff]   ;;  %v1935_v6 = vld [vmem:[#allocation5 + $0x3ec] ss:$16 sps:$4 sm:$0xff]  }
  0x68   :  { %1268 = vmatmul.mubr.bf16.vlgmr.msra.gmra.mrb[0].mxu0 %v55_v9  ;;  %1397 = vmatmul.mubr.bf16.vlgmr.msra.gmra.mrb[0].mxu1 %v55_v9  ;;  %v1938_v9 = vld [vmem:[#allocation5 + $0x404] ss:$16 sps:$4 sm:$0xff]  }
  0x69   :  { %1279 = vmatpush1.bf16.msra.mxu0 %v1840_v7  ;;  %1408 = vmatpush1.bf16.msra.mxu1 %v1843_v8  ;;  %v1930_v7 = vld [vmem:[#allocation5 + $0x3e0] ss:$16 sps:$4 sm:$0xff]   ;;  %v1933_v8 = vld [vmem:[#allocation5 + $0x3e8] ss:$16 sps:$4 sm:$0xff]  }
  0x6a   :  { %1280 = vmatprep.subr.bf16.mxu0 %v1848_v10  ;;  %1409 = vmatprep.subr.bf16.mxu1 %v1851_v11  ;;  %v45_v10 = vld [vmem:[#allocation2 + $0x10] sm:$0xff]  ;;  %v51_v11 = vld [vmem:[#allocation2 + $0x40] sm:$0xff] }
  0x6b   :  { %1310 = vmatprep.mubr.bf16.mxu0 %v58_v36  ;;  %1439 = vmatprep.mubr.bf16.mxu1 %v58_v36  ;;  %v1971_v36 = vld [vmem:[#allocation5 + $0x4ac] ss:$16 sps:$4 sm:$0xff]  }
  0x6d   :  { %1281 = vmatpush1.bf16.msra.mxu0 %v1846_v12  ;;  %1410 = vmatpush1.bf16.msra.mxu1 %v1849_v13  ;;  %v1941_v12 = vld [vmem:[#allocation5 + $0x40c] ss:$16 sps:$4 sm:$0xff]   ;;  %v1936_v13 = vld [vmem:[#allocation5 + $0x400] ss:$16 sps:$4 sm:$0xff]  }
  0x6e   :  { %1282 = vmatprep.subr.bf16.mxu0 %v1854_v14  ;;  %1411 = vmatprep.subr.bf16.mxu1 %v1857_v15  ;;  %v1939_v14 = vld [vmem:[#allocation5 + $0x408] ss:$16 sps:$4 sm:$0xff]   ;;  %v57_v15 = vpack.c.bf16 %v51_v11, %v45_v10  ;;  %v2028_v11 = vld [vmem:[#allocation5 + $0x5e4] ss:$16 sps:$4 sm:$0xff]  }
  0x6f   :  { %v2023_v10 = vld [vmem:[#allocation5 + $0x5c8] ss:$16 sps:$4 sm:$0xff]  }
  0x71   :  { %1283 = vmatpush1.bf16.msra.mxu0 %v1852_v16  ;;  %1412 = vmatpush1.bf16.msra.mxu1 %v1855_v17  ;;  %v1944_v16 = vld [vmem:[#allocation5 + $0x424] ss:$16 sps:$4 sm:$0xff]   ;;  %v1947_v17 = vld [vmem:[#allocation5 + $0x42c] ss:$16 sps:$4 sm:$0xff]  }
  0x72   :  { %1284 = vmatprep.subr.bf16.mxu0 %v1860_v18  ;;  %1413 = vmatprep.subr.bf16.mxu1 %v1863_v19  ;;  %v48_v18 = vld [vmem:[#allocation2 + $0x28] sm:$0xff]  ;;  %v54_v19 = vld [vmem:[#allocation2 + $0x58] sm:$0xff] }
  0x75   :  { %1285 = vmatpush1.bf16.msra.mxu0 %v1858_v20  ;;  %1414 = vmatpush1.bf16.msra.mxu1 %v1861_v21  ;;  %v1942_v20 = vld [vmem:[#allocation5 + $0x420] ss:$16 sps:$4 sm:$0xff]   ;;  %v1945_v21 = vld [vmem:[#allocation5 + $0x428] ss:$16 sps:$4 sm:$0xff]  }
  0x76   :  { %1286 = vmatprep.subr.bf16.mxu0 %v1866_v22  ;;  %1415 = vmatprep.subr.bf16.mxu1 %v1869_v23  ;;  %v60_v22 = vpack.c.bf16 %v54_v19, %v48_v18  ;;  %v1950_v23 = vld [vmem:[#allocation5 + $0x444] ss:$16 sps:$4 sm:$0xff]   ;;  %v255_v18 = vlaneseq }
  0x78   :  { %v256_v19 = vshrl.u32 %v255_v18, 7 }
  0x79   :  { %1287 = vmatpush1.bf16.msra.mxu0 %v1864_v24  ;;  %1416 = vmatpush1.bf16.msra.mxu1 %v1867_v25  ;;  %v1953_v24 = vld [vmem:[#allocation5 + $0x44c] ss:$16 sps:$4 sm:$0xff]   ;;  %v1948_v25 = vld [vmem:[#allocation5 + $0x440] ss:$16 sps:$4 sm:$0xff]  }
  0x7a   :  { %1288 = vmatprep.subr.bf16.mxu0 %v1872_v26  ;;  %1417 = vmatprep.subr.bf16.mxu1 %v1875_v27  ;;  %v1951_v26 = vld [vmem:[#allocation5 + $0x448] ss:$16 sps:$4 sm:$0xff]   ;;  %v1956_v27 = vld [vmem:[#allocation5 + $0x464] ss:$16 sps:$4 sm:$0xff]  }
  0x7d   :  { %1289 = vmatpush1.bf16.msra.mxu0 %v1870_v28  ;;  %1418 = vmatpush1.bf16.msra.mxu1 %v1873_v29  ;;  %v1959_v28 = vld [vmem:[#allocation5 + $0x46c] ss:$16 sps:$4 sm:$0xff]   ;;  %v1954_v29 = vld [vmem:[#allocation5 + $0x460] ss:$16 sps:$4 sm:$0xff]  }
  0x7e   :  { %1290 = vmatprep.subr.bf16.mxu0 %v1878_v30  ;;  %1419 = vmatprep.subr.bf16.mxu1 %v1881_v31  ;;  %v1957_v30 = vld [vmem:[#allocation5 + $0x468] ss:$16 sps:$4 sm:$0xff]   ;;  %v1962_v31 = vld [vmem:[#allocation5 + $0x484] ss:$16 sps:$4 sm:$0xff]  }
  0x81   :  { %1291 = vmatpush1.bf16.msra.mxu0 %v1876_v34  ;;  %1420 = vmatpush1.bf16.msra.mxu1 %v1879_v35  ;;  %v1963_v34 = vld [vmem:[#allocation5 + $0x488] ss:$16 sps:$4 sm:$0xff]   ;;  %v1968_v35 = vld [vmem:[#allocation5 + $0x4a4] ss:$16 sps:$4 sm:$0xff]  }
  0x82   :  { %1292 = vmatprep.subr.bf16.mxu0 %v1884_v37  ;;  %1421 = vmatprep.subr.bf16.mxu1 %v1887_v38  ;;  %v1966_v37 = vld [vmem:[#allocation5 + $0x4a0] ss:$16 sps:$4 sm:$0xff]   ;;  %v1969_v38 = vld [vmem:[#allocation5 + $0x4a8] ss:$16 sps:$4 sm:$0xff]  }
  0x85   :  { %1293 = vmatpush1.bf16.msra.mxu0 %v1882_v39  ;;  %1422 = vmatpush1.bf16.msra.mxu1 %v1885_v40  ;;  %v1974_v39 = vld [vmem:[#allocation5 + $0x4c4] ss:$16 sps:$4 sm:$0xff]   ;;  %v1977_v40 = vld [vmem:[#allocation5 + $0x4cc] ss:$16 sps:$4 sm:$0xff]  }
  0x86   :  { %1294 = vmatprep.subr.bf16.mxu0 %v1890_v41  ;;  %1423 = vmatprep.subr.bf16.mxu1 %v1893_v42  ;;  %v1972_v41 = vld [vmem:[#allocation5 + $0x4c0] ss:$16 sps:$4 sm:$0xff]   ;;  %v1975_v42 = vld [vmem:[#allocation5 + $0x4c8] ss:$16 sps:$4 sm:$0xff]  }
  0x89   :  { %1295 = vmatpush1.bf16.msra.mxu0 %v1888_v43  ;;  %1424 = vmatpush1.bf16.msra.mxu1 %v1891_v44  ;;  %v1980_v43 = vld [vmem:[#allocation5 + $0x4e4] ss:$16 sps:$4 sm:$0xff]   ;;  %v1983_v44 = vld [vmem:[#allocation5 + $0x4ec] ss:$16 sps:$4 sm:$0xff]  }
  0x8a   :  { %1296 = vmatprep.subr.bf16.mxu0 %v1896_v45  ;;  %1425 = vmatprep.subr.bf16.mxu1 %v1899_v46  ;;  %v1978_v45 = vld [vmem:[#allocation5 + $0x4e0] ss:$16 sps:$4 sm:$0xff]   ;;  %v1981_v46 = vld [vmem:[#allocation5 + $0x4e8] ss:$16 sps:$4 sm:$0xff]  }
  0x8d   :  { %1297 = vmatpush1.bf16.msra.mxu0 %v1894_v47  ;;  %1426 = vmatpush1.bf16.msra.mxu1 %v1897_v48  ;;  %v1986_v47 = vld [vmem:[#allocation5 + $0x504] ss:$16 sps:$4 sm:$0xff]   ;;  %v1989_v48 = vld [vmem:[#allocation5 + $0x50c] ss:$16 sps:$4 sm:$0xff]  }
  0x8e   :  { %1298 = vmatprep.subr.bf16.mxu0 %v1902_v49  ;;  %1427 = vmatprep.subr.bf16.mxu1 %v1905_v50  ;;  %v1984_v49 = vld [vmem:[#allocation5 + $0x500] ss:$16 sps:$4 sm:$0xff]   ;;  %v1987_v50 = vld [vmem:[#allocation5 + $0x508] ss:$16 sps:$4 sm:$0xff]  }
  0x91   :  { %1299 = vmatpush1.bf16.msra.mxu0 %v1900_v51  ;;  %1428 = vmatpush1.bf16.msra.mxu1 %v1903_v52  ;;  %v1992_v51 = vld [vmem:[#allocation5 + $0x524] ss:$16 sps:$4 sm:$0xff]   ;;  %v1995_v52 = vld [vmem:[#allocation5 + $0x52c] ss:$16 sps:$4 sm:$0xff]  }
  0x92   :  { %1300 = vmatprep.subr.bf16.mxu0 %v1908_v53  ;;  %1429 = vmatprep.subr.bf16.mxu1 %v1911_v54  ;;  %v1990_v53 = vld [vmem:[#allocation5 + $0x520] ss:$16 sps:$4 sm:$0xff]   ;;  %v1993_v54 = vld [vmem:[#allocation5 + $0x528] ss:$16 sps:$4 sm:$0xff]  }
  0x95   :  { %1301 = vmatpush1.bf16.msra.mxu0 %v1906_v55  ;;  %1430 = vmatpush1.bf16.msra.mxu1 %v1909_v56  ;;  %v1998_v55 = vld [vmem:[#allocation5 + $0x544] ss:$16 sps:$4 sm:$0xff]   ;;  %v2001_v56 = vld [vmem:[#allocation5 + $0x54c] ss:$16 sps:$4 sm:$0xff]  }
  0x96   :  { %1302 = vmatprep.subr.bf16.mxu0 %v1914_v57  ;;  %1431 = vmatprep.subr.bf16.mxu1 %v1917_v58  ;;  %v1996_v57 = vld [vmem:[#allocation5 + $0x540] ss:$16 sps:$4 sm:$0xff]   ;;  %v1999_v58 = vld [vmem:[#allocation5 + $0x548] ss:$16 sps:$4 sm:$0xff]  }
  0x99   :  { %1303 = vmatpush1.bf16.msra.mxu0 %v1912_v59  ;;  %1432 = vmatpush1.bf16.msra.mxu1 %v1915_v60  ;;  %v2004_v59 = vld [vmem:[#allocation5 + $0x564] ss:$16 sps:$4 sm:$0xff]   ;;  %v2007_v60 = vld [vmem:[#allocation5 + $0x56c] ss:$16 sps:$4 sm:$0xff]  }
  0x9a   :  { %1304 = vmatprep.subr.bf16.mxu0 %v1920_v61  ;;  %1433 = vmatprep.subr.bf16.mxu1 %v1923_v62  ;;  %v2002_v61 = vld [vmem:[#allocation5 + $0x560] ss:$16 sps:$4 sm:$0xff]   ;;  %v2005_v62 = vld [vmem:[#allocation5 + $0x568] ss:$16 sps:$4 sm:$0xff]  }
  0x9d   :  { %1305 = vmatpush1.bf16.msra.mxu0 %v1918_v63  ;;  %1434 = vmatpush1.bf16.msra.mxu1 %v1921_v0  ;;  %v2010_v63 = vld [vmem:[#allocation5 + $0x584] ss:$16 sps:$4 sm:$0xff]   ;;  %v2013_v0 = vld [vmem:[#allocation5 + $0x58c] ss:$16 sps:$4 sm:$0xff]  }
  0x9e   :  { %1306 = vmatprep.subr.bf16.mxu0 %v1926_v1  ;;  %1435 = vmatprep.subr.bf16.mxu1 %v1929_v2  ;;  %v2008_v1 = vld [vmem:[#allocation5 + $0x580] ss:$16 sps:$4 sm:$0xff]   ;;  %v2011_v2 = vld [vmem:[#allocation5 + $0x588] ss:$16 sps:$4 sm:$0xff]  }
  0xa1   :  { %1307 = vmatpush1.bf16.msra.mxu0 %v1924_v3  ;;  %1436 = vmatpush1.bf16.msra.mxu1 %v1927_v4  ;;  %v2016_v3 = vld [vmem:[#allocation5 + $0x5a4] ss:$16 sps:$4 sm:$0xff]   ;;  %v2019_v4 = vld [vmem:[#allocation5 + $0x5ac] ss:$16 sps:$4 sm:$0xff]  }
  0xa2   :  { %1308 = vmatprep.subr.bf16.mxu0 %v1932_v5  ;;  %1437 = vmatprep.subr.bf16.mxu1 %v1935_v6  ;;  %v2014_v5 = vld [vmem:[#allocation5 + $0x5a0] ss:$16 sps:$4 sm:$0xff]   ;;  %v2017_v6 = vld [vmem:[#allocation5 + $0x5a8] ss:$16 sps:$4 sm:$0xff]  }
  0xa5   :  { %1309 = vmatpush1.bf16.msra.mxu0 %v1930_v7  ;;  %1438 = vmatpush1.bf16.msra.mxu1 %v1933_v8  ;;  %v2022_v7 = vld [vmem:[#allocation5 + $0x5c4] ss:$16 sps:$4 sm:$0xff]   ;;  %v2025_v8 = vld [vmem:[#allocation5 + $0x5cc] ss:$16 sps:$4 sm:$0xff]  }
  0xa6   :  { %1321 = vmatprep.subr.bf16.mxu0 %v1938_v9  ;;  %1450 = vmatprep.subr.bf16.mxu1 %v1941_v12  ;;  %v2020_v9 = vld [vmem:[#allocation5 + $0x5c0] ss:$16 sps:$4 sm:$0xff]   ;;  %v2031_v12 = vld [vmem:[#allocation5 + $0x5ec] ss:$16 sps:$4 sm:$0xff]  }
  0xa8   :  { %1311 = vmatmul.mubr.bf16.vlgmr.msra.gmra.mrb[0].mxu0 %v57_v15  ;;  %1440 = vmatmul.mubr.bf16.vlgmr.msra.gmra.mrb[0].mxu1 %v57_v15  ;;  %v47_v15 = vld [vmem:[#allocation2 + $0x20] sm:$0xff] }
  0xa9   :  { %1322 = vmatpush1.bf16.msra.mxu0 %v1936_v13  ;;  %1451 = vmatpush1.bf16.msra.mxu1 %v1939_v14  ;;  %v2026_v13 = vld [vmem:[#allocation5 + $0x5e0] ss:$16 sps:$4 sm:$0xff]   ;;  %v2029_v14 = vld [vmem:[#allocation5 + $0x5e8] ss:$16 sps:$4 sm:$0xff]  }
  0xaa   :  { %1323 = vmatprep.subr.bf16.mxu0 %v1944_v16  ;;  %1452 = vmatprep.subr.bf16.mxu1 %v1947_v17  ;;  %v53_v16 = vld [vmem:[#allocation2 + $0x50] sm:$0xff] }
  0xab   :  { %1353 = vmatprep.mubr.bf16.mxu0 %v60_v22  ;;  %1482 = vmatprep.mubr.bf16.mxu1 %v60_v22  ;;  %v59_v17 = vpack.c.bf16 %v53_v16, %v47_v15  ;;  %v253_v22 = vld [vmem:[%s2174_s2] sm:$0xf]  ;;  %s2076_s2 = scalar_lea.vmem %s1507_s14, 1024 }
  0xac   :  { %p2077_p2 = scmp.ne.s32.totalorder %s1507_s14, %s2076_s2  ;;  %p2082_p4 = scmp.lt.s32.totalorder %s2076_s2, %s2076_s2 }
  0xad   :  { %1324 = vmatpush1.bf16.msra.mxu0 %v1942_v20  ;;  %1453 = vmatpush1.bf16.msra.mxu1 %v1945_v21  ;;  %v257_v20 = vsub.s32 0, %v256_v19  ;;  %v265_v21 = vsub.s32 2, %v256_v19 }
  0xae   :  { %1325 = vmatprep.subr.bf16.mxu0 %v1950_v23  ;;  %1454 = vmatprep.subr.bf16.mxu1 %v1953_v24  ;;  %v261_v23 = vsub.s32 1, %v256_v19  ;;  %v269_v24 = vsub.s32 3, %v256_v19  ;;  %p2083_p5 = por %p2082_p4, %p2081_p3 }
  0xb0   :  { %p2084_p6 = pnand %p2083_p5, %p2077_p2 }
  0xb1   :  { %1326 = vmatpush1.bf16.msra.mxu0 %v1948_v25  ;;  %1455 = vmatpush1.bf16.msra.mxu1 %v1951_v26  ;;  %v258_v25 = vrot.slane %v253_v22, %v257_v20  ;;  %v266_v26 = vrot.slane %v253_v22, %v265_v21 }
  0xb2   :  { %1327 = vmatprep.subr.bf16.mxu0 %v1956_v27  ;;  %1456 = vmatprep.subr.bf16.mxu1 %v1959_v28  ;;  %v262_v27 = vrot.slane %v253_v22, %v261_v23  ;;  %v270_v28 = vrot.slane %v253_v22, %v269_v24 }
  0xb5   :  { %1328 = vmatpush1.bf16.msra.mxu0 %v1954_v29  ;;  %1457 = vmatpush1.bf16.msra.mxu1 %v1957_v30 }
  0xb6   :  { %1329 = vmatprep.subr.bf16.mxu0 %v1962_v31  ;;  %1458 = vmatprep.subr.bf16.mxu1 %v1965_v32 }
  0xb9   :  { %1330 = vmatpush1.bf16.msra.mxu0 %v1960_v33  ;;  %1459 = vmatpush1.bf16.msra.mxu1 %v1963_v34 }
  0xba   :  { %1331 = vmatprep.subr.bf16.mxu0 %v1968_v35  ;;  %1460 = vmatprep.subr.bf16.mxu1 %v1971_v36 }
  0xbd   :  { %1332 = vmatpush1.bf16.msra.mxu0 %v1966_v37  ;;  %1461 = vmatpush1.bf16.msra.mxu1 %v1969_v38 }
  0xbe   :  { %1333 = vmatprep.subr.bf16.mxu0 %v1974_v39  ;;  %1462 = vmatprep.subr.bf16.mxu1 %v1977_v40 }
  0xc1   :  { %1334 = vmatpush1.bf16.msra.mxu0 %v1972_v41  ;;  %1463 = vmatpush1.bf16.msra.mxu1 %v1975_v42 }
  0xc2   :  { %1335 = vmatprep.subr.bf16.mxu0 %v1980_v43  ;;  %1464 = vmatprep.subr.bf16.mxu1 %v1983_v44 }
  0xc5   :  { %1336 = vmatpush1.bf16.msra.mxu0 %v1978_v45  ;;  %1465 = vmatpush1.bf16.msra.mxu1 %v1981_v46 }
  0xc6   :  { %1337 = vmatprep.subr.bf16.mxu0 %v1986_v47  ;;  %1466 = vmatprep.subr.bf16.mxu1 %v1989_v48 }
  0xc9   :  { %1338 = vmatpush1.bf16.msra.mxu0 %v1984_v49  ;;  %1467 = vmatpush1.bf16.msra.mxu1 %v1987_v50 }
  0xca   :  { %1339 = vmatprep.subr.bf16.mxu0 %v1992_v51  ;;  %1468 = vmatprep.subr.bf16.mxu1 %v1995_v52 }
  0xcd   :  { %1340 = vmatpush1.bf16.msra.mxu0 %v1990_v53  ;;  %1469 = vmatpush1.bf16.msra.mxu1 %v1993_v54 }
  0xce   :  { %1341 = vmatprep.subr.bf16.mxu0 %v1998_v55  ;;  %1470 = vmatprep.subr.bf16.mxu1 %v2001_v56 }
  0xd1   :  { %1342 = vmatpush1.bf16.msra.mxu0 %v1996_v57  ;;  %1471 = vmatpush1.bf16.msra.mxu1 %v1999_v58 }
  0xd2   :  { %1343 = vmatprep.subr.bf16.mxu0 %v2004_v59  ;;  %1472 = vmatprep.subr.bf16.mxu1 %v2007_v60 }
  0xd5   :  { %1344 = vmatpush1.bf16.msra.mxu0 %v2002_v61  ;;  %1473 = vmatpush1.bf16.msra.mxu1 %v2005_v62 }
  0xd6   :  { %1345 = vmatprep.subr.bf16.mxu0 %v2010_v63  ;;  %1474 = vmatprep.subr.bf16.mxu1 %v2013_v0 }
  0xd9   :  { %1346 = vmatpush1.bf16.msra.mxu0 %v2008_v1  ;;  %1475 = vmatpush1.bf16.msra.mxu1 %v2011_v2 }
  0xda   :  { %1347 = vmatprep.subr.bf16.mxu0 %v2016_v3  ;;  %1476 = vmatprep.subr.bf16.mxu1 %v2019_v4 }
  0xdd   :  { %1348 = vmatpush1.bf16.msra.mxu0 %v2014_v5  ;;  %1477 = vmatpush1.bf16.msra.mxu1 %v2017_v6 }
  0xde   :  { %1349 = vmatprep.subr.bf16.mxu0 %v2022_v7  ;;  %1478 = vmatprep.subr.bf16.mxu1 %v2025_v8 }
  0xe1   :  { %1350 = vmatpush1.bf16.msra.mxu0 %v2020_v9  ;;  %1479 = vmatpush1.bf16.msra.mxu1 %v2023_v10 }
  0xe2   :  { %1351 = vmatprep.subr.bf16.mxu0 %v2028_v11  ;;  %1480 = vmatprep.subr.bf16.mxu1 %v2031_v12 }
  0xe5   :  { %1352 = vmatpush1.bf16.msra.mxu0 %v2026_v13  ;;  %1481 = vmatpush1.bf16.msra.mxu1 %v2029_v14 }
  0xe8   :  { %1354 = vmatmul.mubr.bf16.vlgmr.msra.gmra.mrb[0].mxu0 %v59_v17  ;;  %1483 = vmatmul.mubr.bf16.vlgmr.msra.gmra.mrb[0].mxu1 %v59_v17 }
 0x1bb   :  { %v1355_v29 = vpop.f32.mrb[0].mxu0  ;;  %v1484_v30 = vpop.f32.mrb[0].mxu1 }
 0x1bc   :  { %v1711_v31 = vadd.f32 %v1355_v29, %v258_v25  ;;  %v1715_v32 = vadd.f32 %v1484_v30, %v266_v26  ;;  %v1357_v33 = vpop.f32.mrb[1].mxu0  ;;  %v1486_v34 = vpop.f32.mrb[1].mxu1 }
 0x1bd   :  { %v1712_v35 = vadd.f32 %v1357_v33, %v262_v27  ;;  %v1716_v36 = vadd.f32 %v1486_v34, %v270_v28  ;;  %v1359_v37 = vpop.f32.mrb[2].mxu0  ;;  %v1488_v38 = vpop.f32.mrb[2].mxu1 }
 0x1be   :  { %1493 = vst [vmem:[#allocation7] sm:$0xff] %v1711_v31  ;;  %1495 = vst [vmem:[#allocation7 + $0x10] sm:$0xff] %v1715_v32  ;;  %v1713_v39 = vadd.f32 %v1359_v37, %v258_v25  ;;  %v1717_v40 = vadd.f32 %v1488_v38, %v266_v26  ;;  %v1361_v41 = vpop.f32.mrb[3].mxu0  ;;  %v1490_v42 = vpop.f32.mrb[3].mxu1 }
 0x1bf   :  { %1494 = vst [vmem:[#allocation7 + $0x8] sm:$0xff] %v1712_v35  ;;  %1496 = vst [vmem:[#allocation7 + $0x18] sm:$0xff] %v1716_v36  ;;  %v1714_v43 = vadd.f32 %v1361_v41, %v262_v27  ;;  %v1718_v44 = vadd.f32 %v1490_v42, %v270_v28 }
 0x1c0   :  { %1497 = vst [vmem:[#allocation7 + $0x20] sm:$0xff] %v1713_v39  ;;  %1499 = vst [vmem:[#allocation7 + $0x30] sm:$0xff] %v1717_v40 }
 0x1c1   :  { %1498 = vst [vmem:[#allocation7 + $0x28] sm:$0xff] %v1714_v43  ;;  %1500 = vst [vmem:[#allocation7 + $0x38] sm:$0xff] %v1718_v44 }
 0x1c2   :  { %2087 = shalt.err (!%p2084_p6)
}
 0x1c3   :  { %s2088_s17 = scalar_lea.hbm %s2175_s3, 1024 }
 0x1c4   :  { %p2089_p7 = scmp.ne.s32.totalorder %s2175_s3, %s2088_s17  ;;  %p2092_p8 = scmp.lt.u32.totalorder %s2088_s17, %s2175_s3 }
 0x1c6   :  { %p2094_p9 = pnand %p2092_p8, %p2089_p7 }
 0x1c8   :  { %2097 = shalt.err (!%p2094_p9)
}
 0x1c9   :  { %s2111_s22 = smov 512   ;;  %s2112_s23 = smov 32  }
 0x1ca   :  { %1512 = dma.vmem_to_hbm [thread:$0]  %s1507_s14, 1024, %s2175_s3, [#allocation4], %s2111_s22, %s2111_s22, %s2112_s23  }
 0x1cb   :  { %2102 = dma.done.wait [#allocation4], 1024  }
 0x1cc   :  { %2103 = vsyncadd [#allocation4], 4294966272 }
 0x1cd   :  { %1516 = vsyncpa [#allocation3], 1 }
 0x1ce   :  { %1517 = vsyncpa [#allocation6], 1 }
 0x1cf   :  { %1518 = vsyncpa [#allocation4], 1 }

</bundles_post_ra>
